<compile_context>
chip_gen: v7x
topology: tpu7x:2x2x1
jax: 0.10.0
libtpu: 0.0.40
codegen_flags: <defaults>
</compile_context>

<pallas_src>
import jax
import jax.numpy as jnp
from jax.experimental import pallas as pl
from jax.experimental.pallas import tpu as pltpu


def _model_kernel(x_ref, wb_ref, o_ref):
    # x_ref : (N, IN)   f32 in VMEM  (x2 in its natural layout)
    # wb_ref: (IN + 1,) f32 in SMEM  (weights in [0:IN], bias at [IN])
    # o_ref : (N, 1)    f32 in VMEM
    in_f = x_ref.shape[1]
    x = x_ref[...]

    # v2 = x2 @ W.T + b as a scalar-broadcast FMA chain on the VPU
    # (bias folded into the first term; no MXU push/pop, no XLU reduce).
    acc = x[:, 0:1] * wb_ref[0] + wb_ref[in_f]
    for k in range(1, in_f):
        acc = acc + x[:, k:k + 1] * wb_ref[k]

    # v3 = v2 * clamp(v2 + 3, 0, 6) / 6 ; v4 = v3 / 6
    #   -> v4 = v2 * clamp(v2 + 3, 0, 6) * (1/36)   (single constant vmul)
    v4 = acc * jnp.clip(acc + jnp.float32(3.0),
                        jnp.float32(0.0),
                        jnp.float32(6.0)) * jnp.float32(1.0 / 36.0)
    o_ref[...] = v4.astype(o_ref.dtype)


def pack_params(weight, bias):
    """Pack Linear(IN, 1) params into a single (IN+1,) f32 vector.

    Done once at parameter-load time so the per-call path carries exactly one
    SMEM scalar-arg DMA instead of two.
    """
    return jnp.concatenate(
        [weight.reshape(-1), bias.reshape(-1)]).astype(jnp.float32)


def model_forward(x2, wb):
    n, in_f = x2.shape
    assert wb.shape == (in_f + 1,), "expected packed (weight_row, bias)"

    # Advisory cost hint: ~100 flops, a few hundred bytes -> effectively free.
    cost = pl.CostEstimate(
        flops=2 * n * in_f + 5 * n,
        transcendentals=0,
        bytes_accessed=(n * in_f + n + in_f + 1) * 4,
    )

    return pl.pallas_call(
        _model_kernel,
        out_shape=jax.ShapeDtypeStruct((n, 1), jnp.float32),
        in_specs=[
            pl.BlockSpec((n, in_f), lambda: (0, 0)),              # x2 in VMEM
            pl.BlockSpec(memory_space=pltpu.MemorySpace.SMEM),    # packed w+b
        ],
        out_specs=pl.BlockSpec((n, 1), lambda: (0, 0)),
        cost_estimate=cost,
    )(x2, wb)


if __name__ == "__main__":
    key = jax.random.PRNGKey(0)
    kx, kw, kb = jax.random.split(key, 3)

    # Input consistent with the module: x2 = torch.randn(10, 5)
    x2 = jax.random.normal(kx, (10, 5), dtype=jnp.float32)

    # Deterministic Linear(5, 1) parameters (PyTorch-style uniform init range).
    bound = 1.0 / jnp.sqrt(5.0)
    weight = jax.random.uniform(kw, (1, 5), minval=-bound, maxval=bound,
                                dtype=jnp.float32)
    bias = jax.random.uniform(kb, (1,), minval=-bound, maxval=bound,
                              dtype=jnp.float32)

    wb = pack_params(weight, bias)      # once, outside the per-call path
    out = model_forward(x2, wb)
    jax.block_until_ready(out)

    # Pure-JAX reference check.
    v2_ref = x2 @ weight.T + bias
    ref = v2_ref * (jnp.clip(v2_ref + 3.0, 0.0, 6.0) - 0.0) / (6.0 - 0.0) / 6.0
    assert out.shape == (10, 1)
    assert jnp.allclose(out, ref, atol=1e-5, rtol=1e-5)

    print("KERNEL_OK")
</pallas_src>

<mosaic_0001>
module attributes {stable_mosaic.version = 11 : i64} {
  func.func @_model_kernel(%arg0: memref<10x5xf32, #tpu.memory_space<vmem>>, %arg1: memref<6xf32, #tpu.memory_space<smem>>, %arg2: memref<10x1xf32, #tpu.memory_space<vmem>>) attributes {dimension_semantics = [], scalar_prefetch = 0 : i64, scratch_operands = 0 : i64, tpu.core_type = #tpu.core_type<tc>} {
    %c0 = arith.constant 0 : index
    %c0_0 = arith.constant 0 : index
    %0 = vector.load %arg0[%c0, %c0_0] : memref<10x5xf32, #tpu.memory_space<vmem>>, vector<10x5xf32>
    %1 = vector.extract_strided_slice %0 {offsets = [0, 0], sizes = [10, 1], strides = [1, 1]} : vector<10x5xf32> to vector<10x1xf32>
    %c0_1 = arith.constant 0 : index
    %2 = memref.load %arg1[%c0_1] : memref<6xf32, #tpu.memory_space<smem>>
    %3 = vector.broadcast %2 : f32 to vector<10x1xf32>
    %4 = arith.mulf %1, %3 : vector<10x1xf32>
    %c5 = arith.constant 5 : index
    %5 = memref.load %arg1[%c5] : memref<6xf32, #tpu.memory_space<smem>>
    %6 = vector.broadcast %5 : f32 to vector<10x1xf32>
    %7 = arith.addf %4, %6 : vector<10x1xf32>
    %8 = vector.extract_strided_slice %0 {offsets = [0, 1], sizes = [10, 1], strides = [1, 1]} : vector<10x5xf32> to vector<10x1xf32>
    %c1 = arith.constant 1 : index
    %9 = memref.load %arg1[%c1] : memref<6xf32, #tpu.memory_space<smem>>
    %10 = vector.broadcast %9 : f32 to vector<10x1xf32>
    %11 = arith.mulf %8, %10 : vector<10x1xf32>
    %12 = arith.addf %7, %11 : vector<10x1xf32>
    %13 = vector.extract_strided_slice %0 {offsets = [0, 2], sizes = [10, 1], strides = [1, 1]} : vector<10x5xf32> to vector<10x1xf32>
    %c2 = arith.constant 2 : index
    %14 = memref.load %arg1[%c2] : memref<6xf32, #tpu.memory_space<smem>>
    %15 = vector.broadcast %14 : f32 to vector<10x1xf32>
    %16 = arith.mulf %13, %15 : vector<10x1xf32>
    %17 = arith.addf %12, %16 : vector<10x1xf32>
    %18 = vector.extract_strided_slice %0 {offsets = [0, 3], sizes = [10, 1], strides = [1, 1]} : vector<10x5xf32> to vector<10x1xf32>
    %c3 = arith.constant 3 : index
    %19 = memref.load %arg1[%c3] : memref<6xf32, #tpu.memory_space<smem>>
    %20 = vector.broadcast %19 : f32 to vector<10x1xf32>
    %21 = arith.mulf %18, %20 : vector<10x1xf32>
    %22 = arith.addf %17, %21 : vector<10x1xf32>
    %23 = vector.extract_strided_slice %0 {offsets = [0, 4], sizes = [10, 1], strides = [1, 1]} : vector<10x5xf32> to vector<10x1xf32>
    %c4 = arith.constant 4 : index
    %24 = memref.load %arg1[%c4] : memref<6xf32, #tpu.memory_space<smem>>
    %25 = vector.broadcast %24 : f32 to vector<10x1xf32>
    %26 = arith.mulf %23, %25 : vector<10x1xf32>
    %27 = arith.addf %22, %26 : vector<10x1xf32>
    %cst = arith.constant 3.000000e+00 : f32
    %28 = vector.broadcast %cst : f32 to vector<10x1xf32>
    %29 = arith.addf %27, %28 : vector<10x1xf32>
    %cst_2 = arith.constant 0.000000e+00 : f32
    %cst_3 = arith.constant 6.000000e+00 : f32
    %30 = vector.broadcast %cst_2 : f32 to vector<10x1xf32>
    %31 = arith.maximumf %30, %29 : vector<10x1xf32>
    %32 = vector.broadcast %cst_3 : f32 to vector<10x1xf32>
    %33 = arith.minimumf %32, %31 : vector<10x1xf32>
    %34 = arith.mulf %27, %33 : vector<10x1xf32>
    %cst_4 = arith.constant 0.027777778 : f32
    %35 = vector.broadcast %cst_4 : f32 to vector<10x1xf32>
    %36 = arith.mulf %34, %35 : vector<10x1xf32>
    %c0_5 = arith.constant 0 : index
    %c0_6 = arith.constant 0 : index
    %37 = vector.load %arg2[%c0_5, %c0_6] : memref<10x1xf32, #tpu.memory_space<vmem>>, vector<10x1xf32>
    tpu.vector_store %arg2[%c0_5, %c0_6], %36 {strides = array<i32>} : memref<10x1xf32, #tpu.memory_space<vmem>>, vector<10x1xf32>,
    return
  }
}

</mosaic_0001>

<bundles_post_ra>
// kernel: tpu_custom_call.1
= control target key start
LH: loop header
LB: loop body
LE: loop exit
PB: predicated region body
PF: predicated region fallthrough
CT: control target
= control target key end

     0   :  { %7 = vsyncpa [#allocation3], 0  ;;  %s168_s0 = inlined_call_operand.vmem [shape: f32[10,5], index: 0, kind: input, shape index: {}]   ;;  %s169_s1 = inlined_call_operand.vmem [shape: f32[6], index: 1, kind: input, shape index: {}]   ;;  %s170_s2 = inlined_call_operand.vmem [shape: f32[10,1], index: 2, kind: output, shape index: {}]  }
   0x1   :  { %s16_s11 = sshll.u32 %s169_s1, 4  ;;  %s17_s11 = int_to_ptr.vmem [resolvable:$true] %s16_s11 }
   0x2   :  { %s119_s12 = scalar_lea.vmem %s17_s11, 16  ;;  %p124_p1 = scmp.lt.s32.totalorder %s17_s11, %s17_s11 }
   0x3   :  { %p120_p0 = scmp.ne.s32.totalorder %s17_s11, %s119_s12  ;;  %p125_p2 = scmp.lt.s32.totalorder %s119_s12, %s119_s12 }
   0x5   :  { %p126_p3 = por %p125_p2, %p124_p1 }
   0x7   :  { %p127_p4 = pnand %p126_p3, %p120_p0 }
   0x9   :  { %130 = shalt.err (!%p127_p4)
}
   0xa   :  { %s133_s13 = smov [#allocation2]  }
   0xb   :  { %19 = dma.vmem_to_smem %s17_s11, 16, %s133_s13, [#allocation3]  }
   0xc   :  { %131 = dma.done.wait [#allocation3], 16  }
   0xd   :  { %132 = vsyncadd [#allocation3], 4294967280 }
   0xe   :  { %23 = sfence }
   0xf   :  { %s111_s14 = sld [smem:[#allocation2 + $0x2]]  ;;  %s110_s15 = sld [smem:[#allocation2 + $0x1]]  ;;  %v24_v0 = vld [vmem:[%s168_s0] sm:$0xff]  ;;  %v25_v1 = vld [vmem:[%s168_s0 + $0x8] sm:$0x3]  ;;  %vm102_vm0 = vcmask 1024  }
  0x10   :  { %s112_s16 = sld [smem:[#allocation2 + $0x3]]  ;;  %s113_s20 = sld [smem:[#allocation2 + $0x4]]  ;;  %vm100_vm1 = vcmask 7168  }
  0x11   :  { %s134_s21 = smov 126   ;;  %s135_s22 = smov 127  }
  0x12   :  { %s136_s23 = smov 125   ;;  %s137_s0 = smov 124  }
  0x13   :  { %s26_s24 = sld [smem:[#allocation2]]  ;;  %s109_s25 = sld [smem:[#allocation2 + $0x5]] }
  0x15   :  { %v49_v2 = vstv %s111_s14  ;;  %v35_v4 = vstv %s110_s15 }
  0x16   :  { %v50_v3 = vmul.f32 %v49_v2, %v24_v0  ;;  %v36_v5 = vmul.f32 %v35_v4, %v24_v0  ;;  %v51_v6 = vmul.f32 %v49_v2, %v25_v1  ;;  %v37_v7 = vmul.f32 %v35_v4, %v25_v1 }
  0x17   :  { %v63_v8 = vstv %s112_s16  ;;  %v77_v11 = vstv %s113_s20 }
  0x18   :  { %54 = vrot.lane.b32.xlu1 %v50_v3, %s134_s21  ;;  %40 = vrot.lane.b32.xlu0 %v36_v5, %s135_s22  ;;  %v65_v9 = vmul.f32 %v63_v8, %v25_v1  ;;  %v64_v10 = vmul.f32 %v63_v8, %v24_v0  ;;  %v79_v12 = vmul.f32 %v77_v11, %v25_v1 }
  0x19   :  { %v78_v13 = vmul.f32 %v77_v11, %v24_v0  ;;  %v27_v14 = vstv %s26_s24  ;;  %v31_v17 = vstv %s109_s25 }
  0x1a   :  { %v28_v15 = vmul.f32 %v27_v14, %v24_v0  ;;  %v29_v16 = vmul.f32 %v27_v14, %v25_v1 }
  0x1c   :  { %56 = vrot.lane.b32.xlu1 %v51_v6, %s134_s21  ;;  %42 = vrot.lane.b32.xlu0 %v37_v7, %s135_s22  ;;  %v32_v20 = vadd.f32 %v31_v17, %v28_v15  ;;  %v33_v21 = vadd.f32 %v31_v17, %v29_v16 }
  0x20   :  { %70 = vrot.lane.b32.xlu1 %v65_v9, %s136_s23  ;;  %68 = vrot.lane.b32.xlu0 %v64_v10, %s136_s23 }
  0x24   :  { %84 = vrot.lane.b32.xlu1 %v79_v12, %s137_s0  ;;  %82 = vrot.lane.b32.xlu0 %v78_v13, %s137_s0 }
  0x8a   :  { %v55_v18 = vpop.permute.xlu1 %54  ;;  %v41_v19 = vpop.permute.xlu0 %40 }
  0x8b   :  { %v46_v24 = vadd.f32 %v41_v19, %v32_v20 }
  0x8d   :  { %v60_v29 = vadd.f32 %v55_v18, %v46_v24 }
  0x8e   :  { %v57_v22 = vpop.permute.xlu1 %56  ;;  %v43_v23 = vpop.permute.xlu0 %42 }
  0x8f   :  { %v47_v25 = vadd.f32 %v43_v23, %v33_v21 }
  0x91   :  { %v61_v27 = vadd.f32 %v57_v22, %v47_v25 }
  0x92   :  { %v71_v26 = vpop.permute.xlu1 %70  ;;  %v69_v28 = vpop.permute.xlu0 %68 }
  0x93   :  { %v75_v30 = vadd.f32 %v71_v26, %v61_v27  ;;  %v74_v31 = vadd.f32 %v69_v28, %v60_v29 }
  0x96   :  { %v85_v32 = vpop.permute.xlu1 %84  ;;  %v83_v34 = vpop.permute.xlu0 %82 }
  0x97   :  { %v89_v33 = vadd.f32 %v85_v32, %v75_v30  ;;  %v88_v35 = vadd.f32 %v83_v34, %v74_v31 }
  0x99   :  { %v91_v36 = vadd.f32 3.0, %v89_v33  ;;  %v90_v37 = vadd.f32 3.0, %v88_v35 }
  0x9b   :  { %v93_v38 = vmax.f32 %v91_v36, 0.0  ;;  %v92_v39 = vmax.f32 %v90_v37, 0.0 }
  0x9d   :  { %v95_v40 = vmin.f32 %v93_v38, 6.0  ;;  %v94_v41 = vmin.f32 %v92_v39, 6.0 }
  0x9f   :  { %v97_v42 = vmul.f32 %v95_v40, %v89_v33  ;;  %v96_v43 = vmul.f32 %v94_v41, %v88_v35 }
  0xa1   :  { %v99_v44 = vmul.f32 0.027777778, %v97_v42  ;;  %v98_v45 = vmul.f32 0.027777778, %v96_v43 }
  0xa3   :  { %103 = vst.msk [vmem:[%s170_s2 + $0x8] sm:$0x3] %vm102_vm0, %v99_v44 }
  0xa4   :  { %101 = vst.msk [vmem:[%s170_s2] sm:$0xff] %vm100_vm1, %v98_v45 }
  0xa5   :  { %108 = vsyncpa [#allocation3], 1 }

</bundles_post_ra>
